<compile_context>
chip_gen: v6e
topology: v6e:2x2x1
jax: 0.10.0
libtpu: 0.0.40
codegen_flags: <defaults>
</compile_context>

<pallas_src>
import functools

import jax
import jax.numpy as jnp
from jax.experimental import pallas as pl
from jax.experimental.pallas import tpu as pltpu


def feedforward_kernel(*refs, apply_dropout):
    if apply_dropout:
        x_ref, w1_ref, b1_ref, w2_ref, b2_ref, mask_ref, o_ref, acc_ref = refs
    else:
        x_ref, w1_ref, b1_ref, w2_ref, b2_ref, o_ref, acc_ref = refs
        mask_ref = None

    j = pl.program_id(1)

    @pl.when(j == 0)
    def _init():
        acc_ref[...] = jnp.zeros_like(acc_ref)

    # ---- fc1 (partial over the d_ff tile): bf16 MXU operands, f32 accumulate.
    x_bf = x_ref[...].astype(jnp.bfloat16)                        # (tm, D)
    h = jnp.dot(x_bf, w1_ref[...],                                # (tm, tf) f32
                preferred_element_type=jnp.float32)
    h = h + b1_ref[...]                                           # bias (1, tf)

    # ---- ReLU + dropout (mask is pre-scaled by 1/(1-p); f32 VPU work).
    h = jnp.maximum(h, 0.0)
    if apply_dropout:
        h = h * mask_ref[...]

    # ---- fc2 partial contribution: (tm, tf) @ (tf, D), accumulate in f32.
    acc_ref[...] += jnp.dot(h.astype(jnp.bfloat16), w2_ref[...],
                            preferred_element_type=jnp.float32)

    @pl.when(j == pl.num_programs(1) - 1)
    def _finalize():
        o_ref[...] = (acc_ref[...] + b2_ref[...]).astype(o_ref.dtype)


def feedforward(x, w1, b1, w2, b2, *, dropout_p=0.1, train=False, seed=0,
                tm=None, tf=None):
    """x: (B, S, D).  Returns fc2(dropout(relu(fc1(x))))."""
    B, S, D = x.shape
    d_ff = w1.shape[1]
    rows = B * S
    x2 = x.reshape(rows, D)

    # Row tile: MXU-aligned, bounded (don't default to all rows for big inputs).
    if tm is None:
        tm = rows if rows <= 256 else 256
    assert rows % tm == 0, "rows must be divisible by tm"

    # d_ff tile: multiple of 128 lanes, bounds the resident W1/W2 slabs.
    if tf is None:
        tf = d_ff if d_ff <= 512 else 512
    assert d_ff % tf == 0, "d_ff must be divisible by tf"

    # Cast weights to bf16 ONCE here (MXU-native); biases stay f32.
    w1b = w1.astype(jnp.bfloat16)
    w2b = w2.astype(jnp.bfloat16)
    b1f = b1.reshape(1, d_ff).astype(jnp.float32)
    b2f = b2.reshape(1, D).astype(jnp.float32)

    apply_dropout = bool(train and dropout_p > 0.0)

    inputs = [x2, w1b, b1f, w2b, b2f]
    in_specs = [
        pl.BlockSpec((tm, D), lambda i, j: (i, 0)),   # x rows
        pl.BlockSpec((D, tf), lambda i, j: (0, j)),   # W1 column slab
        pl.BlockSpec((1, tf), lambda i, j: (0, j)),   # b1 slab
        pl.BlockSpec((tf, D), lambda i, j: (j, 0)),   # W2 row slab
        pl.BlockSpec((1, D), lambda i, j: (0, 0)),    # b2
    ]
    if apply_dropout:
        key = jax.random.PRNGKey(seed)
        keep = jax.random.bernoulli(key, 1.0 - dropout_p, (rows, d_ff))
        mask = keep.astype(jnp.float32) * (1.0 / (1.0 - dropout_p))
        inputs.append(mask)
        in_specs.append(pl.BlockSpec((tm, tf), lambda i, j: (i, j)))

    kernel = functools.partial(feedforward_kernel, apply_dropout=apply_dropout)

    out2 = pl.pallas_call(
        kernel,
        out_shape=jax.ShapeDtypeStruct((rows, D), x.dtype),
        grid=(rows // tm, d_ff // tf),
        in_specs=in_specs,
        out_specs=pl.BlockSpec((tm, D), lambda i, j: (i, 0)),
        scratch_shapes=[pltpu.VMEM((tm, D), jnp.float32)],
        compiler_params=pltpu.CompilerParams(
            # rows independent -> parallel (megacore on v7x);
            # d_ff is the fc2 reduction axis -> arbitrary (and last).
            dimension_semantics=("parallel", "arbitrary"),
            vmem_limit_bytes=48 * 1024 * 1024,
        ),
    )(*inputs)
    return out2.reshape(B, S, D)


def _reference(x, w1, b1, w2, b2, mask=None):
    """Pure-JAX reference with the same bf16-operand / f32-accumulate matmuls."""
    B, S, D = x.shape
    xf = x.reshape(B * S, D)
    h = jnp.dot(xf.astype(jnp.bfloat16), w1.astype(jnp.bfloat16),
                preferred_element_type=jnp.float32) + b1.astype(jnp.float32)
    h = jnp.maximum(h, 0.0)
    if mask is not None:
        h = h * mask
    y = jnp.dot(h.astype(jnp.bfloat16), w2.astype(jnp.bfloat16),
                preferred_element_type=jnp.float32) + b2.astype(jnp.float32)
    return y.reshape(B, S, D).astype(x.dtype)


if __name__ == "__main__":
    # Small but lane-dense shapes: batch=2, seq=8, embedding_dim=128, d_ff=256.
    B, S, D, D_FF = 2, 8, 128, 256
    key = jax.random.PRNGKey(0)
    kx, kw1, kw2, kb1, kb2 = jax.random.split(key, 5)

    x = jax.random.normal(kx, (B, S, D), dtype=jnp.float32)
    w1 = jax.random.normal(kw1, (D, D_FF), dtype=jnp.float32) / jnp.sqrt(D)
    b1 = jax.random.normal(kb1, (D_FF,), dtype=jnp.float32) * 0.02
    w2 = jax.random.normal(kw2, (D_FF, D), dtype=jnp.float32) / jnp.sqrt(D_FF)
    b2 = jax.random.normal(kb2, (D,), dtype=jnp.float32) * 0.02

    # --- Eval mode (dropout = identity, like nn.Dropout.eval()).
    out_eval = feedforward(x, w1, b1, w2, b2,
                           dropout_p=0.1, train=False, tf=128)
    jax.block_until_ready(out_eval)
    ref_eval = _reference(x, w1, b1, w2, b2)
    assert jnp.allclose(out_eval, ref_eval, atol=2e-2, rtol=2e-2), \
        "eval-mode mismatch vs reference"

    # --- Train mode: dropout mask is deterministic given `seed`, so we can
    #     rebuild it here and check exactly against the reference.
    seed = 1234
    p = 0.1
    out_train = feedforward(x, w1, b1, w2, b2,
                            dropout_p=p, train=True, seed=seed, tf=128)
    jax.block_until_ready(out_train)
    keep = jax.random.bernoulli(jax.random.PRNGKey(seed), 1.0 - p, (B * S, D_FF))
    mask = keep.astype(jnp.float32) * (1.0 / (1.0 - p))
    ref_train = _reference(x, w1, b1, w2, b2, mask=mask)
    assert jnp.allclose(out_train, ref_train, atol=2e-2, rtol=2e-2), \
        "train-mode mismatch vs reference"

    print("KERNEL_OK")
</pallas_src>

<mosaic_0001>
module attributes {stable_mosaic.version = 11 : i64} {
  func.func @feedforward_kernel(%arg0: i32, %arg1: i32, %arg2: memref<16x128xf32, #tpu.memory_space<vmem>>, %arg3: memref<128x128xbf16, #tpu.memory_space<vmem>>, %arg4: memref<1x128xf32, #tpu.memory_space<vmem>>, %arg5: memref<128x128xbf16, #tpu.memory_space<vmem>>, %arg6: memref<1x128xf32, #tpu.memory_space<vmem>>, %arg7: memref<16x128xf32, #tpu.memory_space<vmem>>, %arg8: memref<16x128xf32, #tpu.memory_space<vmem>>) attributes {dimension_semantics = [#tpu.dimension_semantics<parallel>, #tpu.dimension_semantics<arbitrary>], iteration_bounds = array<i64: 1, 2>, scalar_prefetch = 0 : i64, scratch_operands = 1 : i64, tpu.core_type = #tpu.core_type<tc>, window_params = [{transform_indices = @transform_0, window_bounds = array<i64: 16, 128>}, {transform_indices = @transform_1, window_bounds = array<i64: 128, 128>}, {transform_indices = @transform_2, window_bounds = array<i64: 1, 128>}, {transform_indices = @transform_3, window_bounds = array<i64: 128, 128>}, {pipeline_mode = #tpu.pipeline_mode<synchronous>, transform_indices = @transform_4, window_bounds = array<i64: 1, 128>}, {transform_indices = @transform_5, window_bounds = array<i64: 16, 128>}]} {
    %c0_i32 = arith.constant 0 : i32
    %0 = arith.cmpi eq, %arg1, %c0_i32 : i32
    %1 = arith.extui %0 : i1 to i32
    %c0_i32_0 = arith.constant 0 : i32
    %2 = arith.cmpi ne, %1, %c0_i32_0 : i32
    scf.if %2 {
      %cst_15 = arith.constant 0.000000e+00 : f32
      %21 = vector.broadcast %cst_15 : f32 to vector<16x128xf32>
      %c0_16 = arith.constant 0 : index
      %c0_17 = arith.constant 0 : index
      %22 = vector.load %arg8[%c0_16, %c0_17] : memref<16x128xf32, #tpu.memory_space<vmem>>, vector<16x128xf32>
      tpu.vector_store %arg8[%c0_16, %c0_17], %21 {strides = array<i32>} : memref<16x128xf32, #tpu.memory_space<vmem>>, vector<16x128xf32>,
    } else {
    }
    %c0 = arith.constant 0 : index
    %c0_1 = arith.constant 0 : index
    %3 = vector.load %arg2[%c0, %c0_1] : memref<16x128xf32, #tpu.memory_space<vmem>>, vector<16x128xf32>
    %4 = arith.truncf %3 : vector<16x128xf32> to vector<16x128xbf16>
    %c0_2 = arith.constant 0 : index
    %c0_3 = arith.constant 0 : index
    %5 = vector.load %arg3[%c0_2, %c0_3] : memref<128x128xbf16, #tpu.memory_space<vmem>>, vector<128x128xbf16>
    %cst = arith.constant dense<0.000000e+00> : vector<16x128xf32>
    %6 = tpu.matmul %4, %5, %cst {dimension_numbers = #tpu.dot_dimension_numbers<[1], [0], [0], [1], [0, 0, 1, 1], [], []>} : vector<16x128xbf16>, vector<128x128xbf16>, vector<16x128xf32> -> vector<16x128xf32>
    %c0_4 = arith.constant 0 : index
    %c0_5 = arith.constant 0 : index
    %7 = vector.load %arg4[%c0_4, %c0_5] : memref<1x128xf32, #tpu.memory_space<vmem>>, vector<1x128xf32>
    %8 = vector.broadcast %7 : vector<1x128xf32> to vector<16x128xf32>
    %9 = arith.addf %6, %8 : vector<16x128xf32>
    %cst_6 = arith.constant 0.000000e+00 : f32
    %10 = vector.broadcast %cst_6 : f32 to vector<16x128xf32>
    %11 = arith.maximumf %9, %10 : vector<16x128xf32>
    %c0_7 = arith.constant 0 : index
    %c0_8 = arith.constant 0 : index
    %12 = vector.load %arg8[%c0_7, %c0_8] : memref<16x128xf32, #tpu.memory_space<vmem>>, vector<16x128xf32>
    %13 = arith.truncf %11 : vector<16x128xf32> to vector<16x128xbf16>
    %c0_9 = arith.constant 0 : index
    %c0_10 = arith.constant 0 : index
    %14 = vector.load %arg5[%c0_9, %c0_10] : memref<128x128xbf16, #tpu.memory_space<vmem>>, vector<128x128xbf16>
    %cst_11 = arith.constant dense<0.000000e+00> : vector<16x128xf32>
    %15 = tpu.matmul %13, %14, %cst_11 {dimension_numbers = #tpu.dot_dimension_numbers<[1], [0], [0], [1], [0, 0, 1, 1], [], []>} : vector<16x128xbf16>, vector<128x128xbf16>, vector<16x128xf32> -> vector<16x128xf32>
    %16 = arith.addf %12, %15 : vector<16x128xf32>
    %c0_12 = arith.constant 0 : index
    %c0_13 = arith.constant 0 : index
    %17 = vector.load %arg8[%c0_12, %c0_13] : memref<16x128xf32, #tpu.memory_space<vmem>>, vector<16x128xf32>
    tpu.vector_store %arg8[%c0_12, %c0_13], %16 {strides = array<i32>} : memref<16x128xf32, #tpu.memory_space<vmem>>, vector<16x128xf32>,
    %c1_i32 = arith.constant 1 : i32
    %18 = arith.cmpi eq, %arg1, %c1_i32 : i32
    %19 = arith.extui %18 : i1 to i32
    %c0_i32_14 = arith.constant 0 : i32
    %20 = arith.cmpi ne, %19, %c0_i32_14 : i32
    scf.if %20 {
      %c0_15 = arith.constant 0 : index
      %c0_16 = arith.constant 0 : index
      %21 = vector.load %arg8[%c0_15, %c0_16] : memref<16x128xf32, #tpu.memory_space<vmem>>, vector<16x128xf32>
      %c0_17 = arith.constant 0 : index
      %c0_18 = arith.constant 0 : index
      %22 = vector.load %arg6[%c0_17, %c0_18] : memref<1x128xf32, #tpu.memory_space<vmem>>, vector<1x128xf32>
      %23 = vector.broadcast %22 : vector<1x128xf32> to vector<16x128xf32>
      %24 = arith.addf %21, %23 : vector<16x128xf32>
      %c0_19 = arith.constant 0 : index
      %c0_20 = arith.constant 0 : index
      %25 = vector.load %arg7[%c0_19, %c0_20] : memref<16x128xf32, #tpu.memory_space<vmem>>, vector<16x128xf32>
      tpu.vector_store %arg7[%c0_19, %c0_20], %24 {strides = array<i32>} : memref<16x128xf32, #tpu.memory_space<vmem>>, vector<16x128xf32>,
    } else {
    }
    return
  }
  func.func @transform_0(%arg0: i32, %arg1: i32) -> (i32, i32) {
    %c0_i32 = arith.constant 0 : i32
    %c0_i32_0 = arith.constant 0 : i32
    return %arg0, %c0_i32 : i32, i32
  }
  func.func @transform_1(%arg0: i32, %arg1: i32) -> (i32, i32) {
    %c0_i32 = arith.constant 0 : i32
    %c0_i32_0 = arith.constant 0 : i32
    return %c0_i32, %arg1 : i32, i32
  }
  func.func @transform_2(%arg0: i32, %arg1: i32) -> (i32, i32) {
    %c0_i32 = arith.constant 0 : i32
    %c0_i32_0 = arith.constant 0 : i32
    return %c0_i32, %arg1 : i32, i32
  }
  func.func @transform_3(%arg0: i32, %arg1: i32) -> (i32, i32) {
    %c0_i32 = arith.constant 0 : i32
    %c0_i32_0 = arith.constant 0 : i32
    return %arg1, %c0_i32 : i32, i32
  }
  func.func @transform_4(%arg0: i32, %arg1: i32) -> (i32, i32) {
    %c0_i32 = arith.constant 0 : i32
    %c0_i32_0 = arith.constant 0 : i32
    %c0_i32_1 = arith.constant 0 : i32
    return %c0_i32, %c0_i32_0 : i32, i32
  }
  func.func @transform_5(%arg0: i32, %arg1: i32) -> (i32, i32) {
    %c0_i32 = arith.constant 0 : i32
    %c0_i32_0 = arith.constant 0 : i32
    return %arg0, %c0_i32 : i32, i32
  }
}

</mosaic_0001>

<bundles_post_ra>
// kernel: tpu_custom_call.1
= control target key start
LH: loop header
LB: loop body
LE: loop exit
PB: predicated region body
PF: predicated region fallthrough
CT: control target
= control target key end

     0   :  { %10 = vsyncpa [#allocation4], 0  ;;  %s1308_s0 = inlined_call_operand.hbm [shape: f32[16,128], index: 0, kind: input, shape index: {}]   ;;  %s1309_s1 = inlined_call_operand.hbm [shape: bf16[128,256], index: 1, kind: input, shape index: {}]   ;;  %s1310_s2 = inlined_call_operand.vmem [shape: f32[1,256], index: 2, kind: input, shape index: {}]   ;;  %s1311_s3 = inlined_call_operand.hbm [shape: bf16[256,128], index: 3, kind: input, shape index: {}]   ;;  %s1312_s4 = inlined_call_operand.vmem [shape: f32[1,128], index: 4, kind: input, shape index: {}]   ;;  %s1313_s5 = inlined_call_operand.hbm [shape: f32[16,128], index: 5, kind: output, shape index: {}]  }
   0x1   :  { %11 = vsyncpa [#allocation7], 0 }
   0x2   :  { %13 = vsyncpa [#allocation7 + $0x1], 0 }
   0x3   :  { %14 = vsyncpa [#allocation5], 0  ;;  %s1101_s18 = smov 0   ;;  %s1103_s19 = smov 0  }
   0x4   :  { %s1105_s20 = smov 0   ;;  %s1107_s21 = smov 0  }
   0x5   :  { %s1109_s22 = smov 0   ;;  %s1111_s23 = smov 0  }
   0x6 LB: > { %s29_s24 = sadd.s32 1, %s1052_s22  ;;  %s65_s25 = sadd.s32 1, %s1044_s20  ;;  %s1056_s23 = sphi %s1111_s23, %s20_s23   ;;  %s1052_s22 = sphi %s1109_s22, %s1322_s22   ;;  %s1048_s21 = sphi %s1107_s21, %s1321_s21   ;;  %s1044_s20 = sphi %s1105_s20, %s1320_s20   ;;  %s1040_s19 = sphi %s1103_s19, %s1319_s19   ;;  %s1036_s18 = sphi %s1101_s18, %s1318_s18  }
   0x7   : > { %p30_p0 = scmp.ge.s32.totalorder %s29_s24, 2  ;;  %p72_p1 = scmp.ne.s32.totalorder %s1044_s20, %s1040_s19 }
   0x8   : > { %p73_p2 = scmp.eq.s32.totalorder %s1056_s23, 0  ;;  %p813_p4 = scmp.lt.s32.totalorder %s1056_s23, 2 }
   0x9   : > { %s1324_s24 = smov (%p30_p0, %s29_s24), 0  ;;  %s220_s27 = sand.u32 1, %s1056_s23  }
   0xa   : > { %p74_p3 = por %p73_p2, %p72_p1  ;;  %s62_s26 = ssub.s32 %s1052_s22, %s1324_s24 }
   0xb   : > { %p63_p5 = scmp.eq.s32.totalorder %s62_s26, 0  ;;  %s222_s28 = sand.u32 1, %s1044_s20  }
   0xc   : > { %s1146_s30 = sshll.u32 %s222_s28, 6  ;;  %s698_s6 = sshll.u32 %s1052_s22, 6 }
   0xd   : > { %s1144_s29 = scalar_select %p63_p5, %s1044_s20, %s65_s25  }
   0xe   : > { %s229_s9 = scalar_lea.hbm %s1309_s1, %s698_s6  ;;  %s224_s10 = scalar_lea.vmem [#allocation6], %s1146_s30 }
   0xf   : > { %s230_s11 = sshll.u32 %s224_s10, 4  ;;  %p1153_p6 = pnand %p813_p4, %p74_p3  ;;  %s231_s11 = int_to_ptr.vmem [resolvable:$true] %s230_s11 }
  0x10   : > { %s1157_s13 = scalar_lea.sflag [#allocation7], %s220_s27  ;;  %s905_s14 = scalar_lea.vmem %s231_s11, 1024 }
  0x11   : > { %p894_p7 = pneg %p1153_p6  ;;  %p906_p8 = scmp.ne.s32.totalorder %s231_s11, %s905_s14 }
  0x12   : > { %s1058_s15 = smov [#allocation6]  }
  0x13   : > { %p908_p9 = pnand %p906_p8, %p894_p7  ;;  %s910_s16 = sshll.u32 %s1058_s15, 4  ;;  %s911_s16 = int_to_ptr.vmem [resolvable:$false] %s910_s16 }
  0x14   : > { %s912_s17 = scalar_lea.vmem %s911_s16, 2048  ;;  %p913_p11 = scmp.lt.s32.totalorder %s231_s11, %s911_s16 }
  0x15   : > { %p909_p10 = pneg %p908_p9  ;;  %p914_p12 = scmp.lt.s32.totalorder %s912_s17, %s905_s14 }
  0x17   : > { %p915_p13 = por %p914_p12, %p913_p11 }
  0x19   : > { %p916_p0 = pnand %p915_p13, %p909_p10 }
  0x1b   : > { %919 = shalt.err (!%p916_p0)
}
  0x1c   : > { %s1059_s25 = smov 128   ;;  %s1060_s26 = smov 64  }
  0x1d   : > { %s1061_s27 = smov 4   ;;  %s1171_s28 = sadd.s32 4294967295, %s1056_s23  }
  0x1e   : > { %808 = dma.hbm_to_vmem [thread:$0]  (!%p1153_p6), %s229_s9, 1024, %s231_s11, %s1157_s13, %s1059_s25, %s1060_s26, %s1061_s27  }
  0x1f   : > { %p78_p1 = scmp.ne.s32.totalorder %s1040_s19, %s1036_s18  ;;  %p79_p2 = scmp.eq.s32.totalorder %s1171_s28, 0 }
  0x20   : > { %p694_p3 = scmp.ge.s32.totalorder %s1056_s23, 1  ;;  %p188_p4 = scmp.lt.s32.totalorder %s1056_s23, 3 }
  0x21   : > { %p1180_p5 = por %p79_p2, %p78_p1  ;;  %s1062_s8 = smov [#allocation3]  }
  0x22   : > { %p1184_p8 = pnand %p694_p3, %p188_p4  ;;  %s203_s9 = sshll.u32 %s1062_s8, 4  ;;  %s204_s9 = int_to_ptr.vmem [resolvable:$true] %s203_s9 }
  0x23   : > { %s730_s10 = sshll.u32 %s1052_s22, 10  ;;  %s250_s18 = scalar_lea.vmem [#allocation8], %s1146_s30 }
  0x24   : > { %p801_p9 = pneg %p1184_p8  ;;  %s257_s11 = sshll.u32 %s250_s18, 4  ;;  %s1203_s11 = int_to_ptr.vmem [resolvable:$true] %s257_s11 }
  0x25   : > { %s1201_s17 = scalar_lea.hbm %s1311_s3, %s730_s10  ;;  %s931_s8 = scalar_lea.vmem %s204_s9, 256 }
  0x26   : > { %p1194_p10 = pnand %p801_p9, %p79_p2  ;;  %p932_p12 = scmp.ne.s32.totalorder %s204_s9, %s931_s8 }
  0x27   : > { %p939_p1 = scmp.lt.s32.totalorder %s204_s9, %s204_s9  ;;  %p940_p3 = scmp.lt.s32.totalorder %s931_s8, %s931_s8 }
  0x28   : > { %p922_p11 = pneg %p1194_p10 }
  0x29   : > { %p941_p4 = por %p940_p3, %p939_p1 }
  0x2a   : > { %p934_p13 = pnand %p932_p12, %p922_p11 }
  0x2c   : > { %p935_p0 = pneg %p934_p13 }
  0x2e   : > { %p942_p9 = pnand %p941_p4, %p935_p0 }
  0x30   : > { %945 = shalt.err (!%p942_p9)
}
  0x31   : > { %s1063_s30 = smov 8   ;;  %s959_s15 = scalar_lea.vmem %s1203_s11, 1024 }
  0x32   : > { %804 = dma.hbm_to_vmem [thread:$0]  (!%p1194_p10), %s1308_s0, 256, %s204_s9, [#allocation4], %s1059_s25, %s1059_s25, %s1063_s30  }
  0x33   : > { %p960_p11 = scmp.ne.s32.totalorder %s1203_s11, %s959_s15  ;;  %s1064_s16 = smov [#allocation8]  }
  0x34   : > { %s964_s8 = sshll.u32 %s1064_s16, 4  ;;  %s965_s8 = int_to_ptr.vmem [resolvable:$false] %s964_s8 }
  0x35   : > { %p962_p12 = pnand %p960_p11, %p894_p7  ;;  %s966_s14 = scalar_lea.vmem %s965_s8, 2048 }
  0x36   : > { %p967_p0 = scmp.lt.s32.totalorder %s1203_s11, %s965_s8  ;;  %p968_p1 = scmp.lt.s32.totalorder %s966_s14, %s959_s15 }
  0x37   : > { %p963_p13 = pneg %p962_p12 }
  0x38   : > { %p969_p3 = por %p968_p1, %p967_p0 }
  0x3a   : > { %p970_p4 = pnand %p969_p3, %p963_p13 }
  0x3c   : > { %973 = shalt.err (!%p970_p4)
}
  0x3d   : > { %811 = dma.hbm_to_vmem [thread:$0]  (!%p1153_p6), %s1201_s17, 1024, %s1203_s11, %s1157_s13, %s1060_s26, %s1060_s26, %s1061_s27  }
  0x3e   : > { %269 = sbr.rel (%p1184_p8) target bundleno = 544 (0x220), region = 40 }
  0x43   : > { %1023 = dma.done.wait (%p79_p2), [#allocation4], 256  }
  0x44   : > { %1025 = vsyncadd (%p79_p2), [#allocation4], 4294967040  ;;  %s275_s12 = sand.u32 1, %s1171_s28   ;;  %s277_s25 = sand.u32 1, %s1040_s19  }
  0x45   : > { %s704_s9 = sshll.u32 %s277_s25, 6  ;;  %s276_s30 = scalar_lea.sflag [#allocation7], %s275_s12 }
  0x46   : > { %s1236_s10 = scalar_lea.vmem [#allocation6], %s704_s9 }
  0x47   : > { %1027 = dma.done.wait (%p1180_p5), %s276_s30, 2048  }
  0x48   : > { %1029 = vsyncadd (%p1180_p5), %s276_s30, 4294965248  ;;  %p319_p6 = scmp.lt.s32.totalorder %s1048_s21, 1  ;;  %s1250_s11 = scalar_lea.vmem [#allocation8], %s704_s9 }
  0x49   : > { %p706_p7 = scmp.ne.s32.totalorder %s1048_s21, 0 }
  0x4a   : > { %s1244_s13 = scalar_select %p319_p6, %s1048_s21, 1 }
  0x4b   : > { %328 = sbr.rel (%p706_p7) target bundleno = 82 (0x52), region = 56 }
  0x4c   : > { %s321_s7 = scalar_lea.vmem %s1310_s2, %s1244_s13 }
  0x50   : > { %v1065_v0 = vmov 0.0  }
  0x51   : > { %329 = vst [vmem:[#allocation2] sm:$0xff] %v1065_v0  ;;  %330 = vst [vmem:[#allocation2 + $0x8] sm:$0xff] %v1065_v0 }
  0x52 PF: > { %v876_v1 = vld [vmem:[%s1236_s10 + $0x38] sm:$0xff]   ;;  %v1066_v2 = vmov 0.0   ;;  %v877_v3 = vld [vmem:[%s1236_s10 + $0x30] sm:$0xff]   ;;  %vm1067_vm0 = vmmov 0   ;;  %v878_v4 = vld [vmem:[%s1236_s10 + $0x28] sm:$0xff]   ;;  %p724_p2 = scmp.ne.s32.totalorder %s1048_s21, 1 }
  0x53   : > { %749 = vmatprep.subr.bf16.mxu0 %v1066_v2  ;;  %769 = vmatprep.subr.bf16.mxu1 %v1066_v2  ;;  %v884_v5 = vld [vmem:[%s1250_s11 + $0x38] sm:$0xff]   ;;  %v879_v6 = vld [vmem:[%s1236_s10 + $0x20] sm:$0xff]   ;;  %v885_v7 = vld [vmem:[%s1250_s11 + $0x30] sm:$0xff]  }
  0x54   : > { %750 = vmatpush3.bf16.msra.mxu0 %v876_v1  ;;  %765 = vmatprep.mubr.msk.bf16.mxu0 %vm1067_vm0, %v1066_v2  ;;  %v880_v8 = vld [vmem:[%s1236_s10 + $0x18] sm:$0xff]   ;;  %v886_v9 = vld [vmem:[%s1250_s11 + $0x28] sm:$0xff]   ;;  %v881_v10 = vld [vmem:[%s1236_s10 + $0x10] sm:$0xff]  }
  0x55   : > { %751 = vmatprep.subr.bf16.mxu0 %v1066_v2  ;;  %785 = vmatprep.mubr.msk.bf16.mxu1 %vm1067_vm0, %v1066_v2  ;;  %v887_v11 = vld [vmem:[%s1250_s11 + $0x20] sm:$0xff]   ;;  %v882_v12 = vld [vmem:[%s1236_s10 + $0x8] sm:$0xff]   ;;  %v888_v13 = vld [vmem:[%s1250_s11 + $0x18] sm:$0xff]  }
  0x56   : > { %770 = vmatpush3.bf16.msra.mxu1 %v884_v5  ;;  %v883_v14 = vld [vmem:[%s1236_s10] sm:$0xff]   ;;  %v331_v15 = vld [vmem:[#allocation3] sm:$0xff]  ;;  %v332_v16 = vld [vmem:[#allocation3 + $0x8] sm:$0xff] }
  0x57   : > { %771 = vmatprep.subr.bf16.mxu1 %v1066_v2  ;;  %v333_v17 = vpack.c.bf16 %v332_v16, %v331_v15  ;;  %v889_v18 = vld [vmem:[%s1250_s11 + $0x10] sm:$0xff]   ;;  %v890_v19 = vld [vmem:[%s1250_s11 + $0x8] sm:$0xff]   ;;  %v891_v20 = vld [vmem:[%s1250_s11] sm:$0xff]  }
  0x58   : > { %752 = vmatpush3.bf16.msra.mxu0 %v877_v3  ;;  %v707_v21 = vld [vmem:[%s321_s7] ss:$0 sm:$0xff]  ;;  %v449_v35 = vld [vmem:[#allocation2 + $0x8] sm:$0xff] }
  0x59   : > { %753 = vmatprep.subr.bf16.mxu0 %v1066_v2  ;;  %v448_v31 = vld [vmem:[#allocation2] sm:$0xff] }
  0x5a   : > { %772 = vmatpush3.bf16.msra.mxu1 %v885_v7 }
  0x5b   : > { %773 = vmatprep.subr.bf16.mxu1 %v1066_v2 }
  0x5c   : > { %754 = vmatpush3.bf16.msra.mxu0 %v878_v4 }
  0x5d   : > { %755 = vmatprep.subr.bf16.mxu0 %v1066_v2 }
  0x5e   : > { %774 = vmatpush3.bf16.msra.mxu1 %v886_v9 }
  0x5f   : > { %775 = vmatprep.subr.bf16.mxu1 %v1066_v2 }
  0x60   : > { %756 = vmatpush3.bf16.msra.mxu0 %v879_v6 }
  0x61   : > { %757 = vmatprep.subr.bf16.mxu0 %v1066_v2 }
  0x62   : > { %776 = vmatpush3.bf16.msra.mxu1 %v887_v11 }
  0x63   : > { %777 = vmatprep.subr.bf16.mxu1 %v1066_v2 }
  0x64   : > { %758 = vmatpush3.bf16.msra.mxu0 %v880_v8 }
  0x65   : > { %759 = vmatprep.subr.bf16.mxu0 %v1066_v2 }
  0x66   : > { %778 = vmatpush3.bf16.msra.mxu1 %v888_v13 }
  0x67   : > { %779 = vmatprep.subr.bf16.mxu1 %v1066_v2 }
  0x68   : > { %760 = vmatpush3.bf16.msra.mxu0 %v881_v10 }
  0x69   : > { %761 = vmatprep.subr.bf16.mxu0 %v1066_v2 }
  0x6a   : > { %780 = vmatpush3.bf16.msra.mxu1 %v889_v18 }
  0x6b   : > { %781 = vmatprep.subr.bf16.mxu1 %v1066_v2 }
  0x6c   : > { %762 = vmatpush3.bf16.msra.mxu0 %v882_v12 }
  0x6d   : > { %763 = vmatprep.subr.bf16.mxu0 %v1066_v2 }
  0x6e   : > { %782 = vmatpush3.bf16.msra.mxu1 %v890_v19 }
  0x6f   : > { %783 = vmatprep.subr.bf16.mxu1 %v1066_v2 }
  0x70   : > { %764 = vmatpush3.bf16.msra.mxu0 %v883_v14 }
  0x72   : > { %784 = vmatpush3.bf16.msra.mxu1 %v891_v20 }
  0x73   : > { %766 = vmatmul.mubr.bf16.vlgmr.msra.gmra.mxu0 %v333_v17 }
 0x133   : > { %v439_v22 = vpop.f32.mrf.mxu0 }
 0x134   : > { %v440_v24 = vadd.f32 %v707_v21, %v439_v22 }
 0x135   : > { %v767_v23 = vpop.f32.mrf.mxu0 }
 0x136   : > { %v446_v28 = vmax.f32 %v440_v24, 0.0 }
 0x137   : > { %v442_v25 = vpop.f32.mrf.mxu0 }
 0x138   : > { %v443_v26 = vadd.f32 %v707_v21, %v442_v25 }
 0x139   : > { %v768_v27 = vpop.f32.mrf.mxu0 }
 0x13a   : > { %v447_v29 = vmax.f32 %v443_v26, 0.0 }
 0x13c   : > { %v450_v30 = vpack.c.bf16 %v447_v29, %v446_v28 }
 0x13e   : > { %786 = vmatmul.mubr.bf16.vlgmr.msra.gmra.mxu1 %v450_v30 }
 0x1fe   : > { %v549_v32 = vpop.f32.mrf.mxu1 }
 0x1ff   : > { %v556_v33 = vadd.f32 %v549_v32, %v448_v31 }
 0x200   : > { %v787_v34 = vpop.f32.mrf.mxu1 }
 0x201   : > { %558 = vst [vmem:[#allocation2] sm:$0xff] %v556_v33  ;;  %563 = sbr.rel (%p724_p2) target bundleno = 528 (0x210), region = 60 }
 0x202   : > { %v552_v36 = vpop.f32.mrf.mxu1 }
 0x203   : > { %v557_v37 = vadd.f32 %v552_v36, %v449_v35 }
 0x204   : > { %v788_v38 = vpop.f32.mrf.mxu1 }
 0x205   : > { %559 = vst [vmem:[#allocation2 + $0x8] sm:$0xff] %v557_v37 }
 0x206   : > { %v725_v40 = vld [vmem:[%s1312_s4] ss:$0 sm:$0xff] }
 0x208   : > { %v564_v39 = vld [vmem:[#allocation2] sm:$0xff] }
 0x209   : > { %v573_v42 = vadd.f32 %v725_v40, %v564_v39 }
 0x20b   : > { %575 = vst [vmem:[#allocation9] sm:$0xff] %v573_v42 }
 0x20c   : > { %v565_v41 = vld [vmem:[#allocation2 + $0x8] sm:$0xff] }
 0x20d   : > { %v574_v43 = vadd.f32 %v725_v40, %v565_v41 }
 0x20f   : > { %576 = vst [vmem:[#allocation9 + $0x8] sm:$0xff] %v574_v43 }
 0x210 PF: > { %p815_p5 = scmp.eq.s32.totalorder %s1171_s28, 1  ;;  %s1068_s16 = smov [#allocation9]  }
 0x211   : > { %s586_s8 = sshll.u32 %s1068_s16, 4  ;;  %s587_s8 = int_to_ptr.vmem [resolvable:$true] %s586_s8 }
 0x212   : > { %s974_s14 = scalar_lea.vmem %s587_s8, 256  ;;  %p981_p11 = scmp.lt.s32.totalorder %s587_s8, %s587_s8 }
 0x213   : > { %p975_p8 = scmp.ne.s32.totalorder %s587_s8, %s974_s14  ;;  %p982_p12 = scmp.lt.s32.totalorder %s974_s14, %s974_s14 }
 0x215   : > { %p976_p10 = pnand %p975_p8, %p815_p5  ;;  %p983_p13 = por %p982_p12, %p981_p11 }
 0x217   : > { %p977_p9 = pneg %p976_p10 }
 0x219   : > { %p984_p0 = pnand %p983_p13, %p977_p9 }
 0x21b   : > { %987 = shalt.err (!%p984_p0)
}
 0x21c   : > { %s1069_s21 = smov 128   ;;  %s1070_s12 = smov 8  }
 0x21d   : > { %798 = dma.vmem_to_hbm [thread:$0]  (%p815_p5), %s587_s8, 256, %s1313_s5, [#allocation5], %s1069_s21, %s1069_s21, %s1070_s12  }
 0x21e   : > { %1031 = dma.done.wait (%p815_p5), [#allocation5], 256  }
 0x21f   : > { %1033 = vsyncadd (%p815_p5), [#allocation5], 4294967040 }
 0x220 PF: > { %s20_s23 = sadd.s32 1, %s1056_s23   ;;  %s1318_s18 = smov %s1040_s19 }
 0x221   : > { %p17_p1 = scmp.ge.s32.totalorder %s20_s23, 4   ;;  %s1319_s19 = smov %s1044_s20 }
 0x222   : > { %s1320_s20 = smov %s1144_s29  ;;  %s1321_s21 = smov %s1052_s22 }
 0x223   : > { %s1322_s22 = smov %s1324_s24  ;;  %19 = sbr.rel (!%p17_p1) target bundleno = 6 (0x6), region = 106 }
 0x228   :  { %602 = vsyncpa [#allocation4], 1 }
 0x229   :  { %604 = vsyncpa [#allocation4 + $0x1], 1 }
 0x22a   :  { %605 = vsyncpa [#allocation7], 1 }
 0x22b   :  { %607 = vsyncpa [#allocation7 + $0x1], 1 }
 0x22c   :  { %608 = vsyncpa [#allocation5], 1 }
 0x22d   :  { %610 = vsyncpa [#allocation5 + $0x1], 1 }

</bundles_post_ra>
